<compile_context>
chip_gen: v6e
topology: v6e:2x2x1
jax: 0.10.0
libtpu: 0.0.40
codegen_flags: <defaults>
</compile_context>

<pallas_src>
import jax
import jax.numpy as jnp
import numpy as np
from jax import lax
from jax.experimental import pallas as pl
from jax.experimental.pallas import tpu as pltpu


# ----------------------------------------------------------------------------
# Bilinear "deconv" helpers (deterministic re-implementation of
# utils.bilinear_upsample_weights; no file / network access).
# ----------------------------------------------------------------------------
def bilinear_filter_1d(factor):
    """1-D bilinear interpolation filter of length 2*factor - factor%2."""
    size = 2 * factor - factor % 2
    center = factor - 1.0 if size % 2 == 1 else factor - 0.5
    og = np.arange(size, dtype=np.float64)
    return (1.0 - np.abs(og - center) / factor).astype(np.float32)


def upsample_matrix(k1d, factor, in_size, out_size):
    """U[y, i] = k1d[y + pad - factor*i]  (== conv_transpose with
    padding=factor//2 and output_padding chosen to hit `out_size`)."""
    k = k1d.shape[0]
    pad = factor // 2
    u = np.zeros((out_size, in_size), np.float32)
    for y in range(out_size):
        for i in range(in_size):
            t = y + pad - factor * i
            if 0 <= t < k:
                u[y, i] = k1d[t]
    return u


def _row_tile(dim, align, cap):
    """Largest row tile <= cap that divides `dim` and is a multiple of `align`;
    falls back to the full dim (always a legal BlockSpec block)."""
    for t in range(min(cap, dim), align - 1, -1):
        if t % align == 0 and dim % t == 0:
            return t
    return dim


# ----------------------------------------------------------------------------
# Phase 1: 1x1 conv (C -> 1) of a low-res side feature, row-tiled, NCHW.
# ----------------------------------------------------------------------------
def _side_map_kernel(x_ref, w_ref, b_ref, o_ref):
    # x_ref: (C, TH, W) row tile (batch dim squeezed); w_ref: SMEM (C,);
    # b_ref: SMEM (1,); o_ref: (TH, W).
    def body(c, acc):
        return acc + w_ref[c] * x_ref[c]          # one (TH, W) FMA per channel

    acc = lax.fori_loop(0, x_ref.shape[0], body,
                        jnp.zeros(x_ref.shape[1:], jnp.float32))
    o_ref[...] = acc + b_ref[0]


def side_map(x, wvec, bias, *, cap=32):
    n, c, hi, wi = x.shape
    th = _row_tile(hi, 8, cap)
    return pl.pallas_call(
        _side_map_kernel,
        out_shape=jax.ShapeDtypeStruct((n, 1, hi, wi), jnp.float32),
        grid=(n, hi // th),
        in_specs=[
            pl.BlockSpec((None, c, th, wi), lambda ni, ti: (ni, 0, ti, 0)),
            pl.BlockSpec(memory_space=pltpu.MemorySpace.SMEM),
            pl.BlockSpec(memory_space=pltpu.MemorySpace.SMEM),
        ],
        out_specs=pl.BlockSpec((None, None, th, wi),
                               lambda ni, ti: (ni, 0, ti, 0)),
        compiler_params=pltpu.CompilerParams(
            dimension_semantics=("parallel", "parallel"),
            vmem_limit_bytes=32 * 1024 * 1024),
    )(x,
      jnp.asarray(wvec, jnp.float32).reshape(c),
      jnp.asarray(bias, jnp.float32).reshape(1))


# ----------------------------------------------------------------------------
# Phase 2: fused s1-conv + banded bilinear upsamples + fuse + sigmoids.
# One grid step == one (TH, W) row band of one image.
# ----------------------------------------------------------------------------
def _decode_kernel(x1_ref, s2_ref, s3_ref, s4_ref, s5_ref,
                   u2h_ref, u2w_ref, u3h_ref, u3w_ref,
                   u4h_ref, u4w_ref, u5h_ref, u5w_ref,
                   w1_ref, scal_ref,
                   ofuse_ref, o1_ref, o2_ref, o3_ref, o4_ref, o5_ref):
    # scal_ref (SMEM, f32[7]) = [b1, fuse_w1..fuse_w5, fuse_b]
    def sigmoid(v):
        # divide replaced by EUP approx reciprocal (VALU slots stay free).
        return pl.reciprocal(1.0 + jnp.exp(-v), approx=True)

    # s1 row band: 1x1 conv over 64 channels as a channel-streamed accumulation.
    def body(c, acc):
        return acc + w1_ref[c] * x1_ref[c]
    s1 = lax.fori_loop(0, x1_ref.shape[0], body,
                       jnp.zeros(x1_ref.shape[1:], jnp.float32)) + scal_ref[0]
    o1_ref[...] = sigmoid(s1)
    fuse = scal_ref[6] + scal_ref[1] * s1

    # Stream each upsampled side map: exact separable conv_transpose as
    # Uh_band @ s_low @ UwT (two small MXU matmuls); write its sigmoid and
    # accumulate into `fuse` immediately so only one full-res map stays live.
    for i, (s_ref, uh_ref, uwT_ref, o_ref) in enumerate((
            (s2_ref, u2h_ref, u2w_ref, o2_ref),
            (s3_ref, u3h_ref, u3w_ref, o3_ref),
            (s4_ref, u4h_ref, u4w_ref, o4_ref),
            (s5_ref, u5h_ref, u5w_ref, o5_ref))):
        band = jnp.dot(uh_ref[...], s_ref[...],
                       preferred_element_type=jnp.float32)        # (TH, Wi)
        up = jnp.dot(band, uwT_ref[...],
                     preferred_element_type=jnp.float32)          # (TH, W)
        o_ref[...] = sigmoid(up)
        fuse = fuse + scal_ref[2 + i] * up

    ofuse_ref[...] = sigmoid(fuse)


def decode_forward(inputs_nchw, params):
    """inputs_nchw: 5 NCHW side features (C = 64,128,256,512,512 at strides
    1,2,4,8,16 relative to the first).  Returns the 6 NCHW sigmoid maps of
    decode.forward: (fuse, s1, s2, s3, s4, s5), each (N, 1, H, W)."""
    xs = [jnp.asarray(x, jnp.float32) for x in inputs_nchw]
    x1 = xs[0]
    n, c1, h, w = x1.shape

    # --- Phase 1: collapse the bulky multi-channel low-res features to
    # single-channel maps (each feature is read from HBM exactly once).
    s_low = [side_map(xs[i], params["w%d" % (i + 1)], params["b%d" % (i + 1)])
             for i in range(1, 5)]

    # --- Exact separable upsample operators; Uh will be banded by the H tile.
    umats = []
    for idx, f in zip((2, 3, 4, 5), (2, 4, 8, 16)):
        k1d = np.asarray(params["k%d" % idx], np.float32)
        hi, wi = xs[idx - 1].shape[2], xs[idx - 1].shape[3]
        umats.append(jnp.asarray(upsample_matrix(k1d, f, hi, h)))     # (H, Hi)
        umats.append(jnp.asarray(upsample_matrix(k1d, f, wi, w).T))   # (Wi, W)

    w1 = jnp.asarray(params["w1"], jnp.float32).reshape(c1)
    scal = jnp.concatenate([
        jnp.reshape(params["b1"], (1,)),
        jnp.asarray(params["w6"], jnp.float32).reshape(5),
        jnp.reshape(params["b6"], (1,)),
    ]).astype(jnp.float32)                                            # (7,)

    # Row tile: multiple of the largest upsample stride (16); cap keeps the
    # x1 tile + output tiles a few MiB even at 320x480 (fits v7x 64 MiB VMEM).
    th = _row_tile(h, 16, 32)

    in_specs = [pl.BlockSpec((None, c1, th, w), lambda ni, ti: (ni, 0, ti, 0))]
    for s in s_low:   # whole single-channel low-res map resident per image
        hi, wi = s.shape[2], s.shape[3]
        in_specs.append(pl.BlockSpec((None, None, hi, wi),
                                     lambda ni, ti: (ni, 0, 0, 0)))
    for j, u in enumerate(umats):
        if j % 2 == 0:   # Uh (H, Hi): banded by the output H-tile axis
            in_specs.append(pl.BlockSpec((th, u.shape[1]),
                                         lambda ni, ti: (ti, 0)))
        else:            # UwT (Wi, W): small, resident (constant index map)
            in_specs.append(pl.BlockSpec(tuple(u.shape),
                                         lambda ni, ti: (0, 0)))
    in_specs += [pl.BlockSpec(memory_space=pltpu.MemorySpace.SMEM)] * 2

    out_shape = tuple(jax.ShapeDtypeStruct((n, 1, h, w), jnp.float32)
                      for _ in range(6))
    out_specs = tuple(pl.BlockSpec((None, None, th, w),
                                   lambda ni, ti: (ni, 0, ti, 0))
                      for _ in range(6))

    outs = pl.pallas_call(
        _decode_kernel,
        out_shape=out_shape,
        grid=(n, h // th),
        in_specs=in_specs,
        out_specs=out_specs,
        compiler_params=pltpu.CompilerParams(
            dimension_semantics=("parallel", "parallel"),
            vmem_limit_bytes=32 * 1024 * 1024),
    )(x1, *s_low, *umats, w1, scal)

    return outs   # (fuse, s1, s2, s3, s4, s5), each (N, 1, H, W)


# ----------------------------------------------------------------------------
# Deterministic parameters matching the module's init scheme.
# ----------------------------------------------------------------------------
def init_params(key):
    ks = jax.random.split(key, 11)
    chans = (64, 128, 256, 512, 512)

    def conv_w(k, c):
        return jax.random.normal(k, (c,), jnp.float32) * 0.01        # normal_(0, 0.01)

    def conv_b(k, fan_in):
        bound = 1.0 / float(np.sqrt(fan_in))                         # PyTorch default bias
        return jax.random.uniform(k, (), jnp.float32, -bound, bound)

    params = {}
    for i, c in enumerate(chans, start=1):
        params["w%d" % i] = conv_w(ks[2 * (i - 1)], c)
        params["b%d" % i] = conv_b(ks[2 * (i - 1) + 1], c)
    params["w6"] = jnp.full((5,), 0.2, jnp.float32)                  # constant_(0.2)
    params["b6"] = conv_b(ks[10], 5)
    for i, f in zip((2, 3, 4, 5), (2, 4, 8, 16)):
        params["k%d" % i] = bilinear_filter_1d(f)                    # bilinear deconv init
    return params


# ----------------------------------------------------------------------------
# Pure-JAX reference (NCHW) for numerical verification only.
# ----------------------------------------------------------------------------
def _ref_forward(inputs_nchw, params):
    x1, x2, x3, x4, x5 = inputs_nchw
    h, w = x1.shape[2], x1.shape[3]

    def conv1x1(x, wt, b):
        return jnp.einsum("nchw,c->nhw", x, wt)[:, None] + b

    def conv_transpose_bilinear(s, k1d, factor, out_hw):
        k1d = jnp.asarray(k1d, jnp.float32)
        k = int(k1d.shape[0])
        p = factor // 2
        kern = jnp.outer(k1d, k1d)[::-1, ::-1][None, None]           # (1,1,k,k) OIHW
        hin, win = s.shape[2], s.shape[3]
        oph = out_hw[0] - ((hin - 1) * factor - 2 * p + k)
        opw = out_hw[1] - ((win - 1) * factor - 2 * p + k)
        return jax.lax.conv_general_dilated(
            s, kern, window_strides=(1, 1),
            padding=((k - 1 - p, k - 1 - p + oph), (k - 1 - p, k - 1 - p + opw)),
            lhs_dilation=(factor, factor),
            dimension_numbers=("NCHW", "OIHW", "NCHW"))

    s1 = conv1x1(x1, params["w1"], params["b1"])
    s2 = conv1x1(x2, params["w2"], params["b2"])
    s3 = conv1x1(x3, params["w3"], params["b3"])
    s4 = conv1x1(x4, params["w4"], params["b4"])
    s5 = conv1x1(x5, params["w5"], params["b5"])
    s2 = conv_transpose_bilinear(s2, params["k2"], 2, (h, w))
    s3 = conv_transpose_bilinear(s3, params["k3"], 4, (h, w))
    s4 = conv_transpose_bilinear(s4, params["k4"], 8, (h, w))
    s5 = conv_transpose_bilinear(s5, params["k5"], 16, (h, w))
    cat = jnp.concatenate([s1, s2, s3, s4, s5], axis=1)
    fuse = jnp.einsum("nchw,c->nhw", cat, params["w6"])[:, None] + params["b6"]
    sig = lambda v: 1.0 / (1.0 + jnp.exp(-v))
    return (sig(fuse), sig(s1), sig(s2), sig(s3), sig(s4), sig(s5))


if __name__ == "__main__":
    key = jax.random.PRNGKey(0)
    kx, kp = jax.random.split(key)

    # Small shapes consistent with the module: batch=2, full-res 64x32 (so the
    # H-tiled grid has 2 row tiles), HED side-feature channels/strides.
    n, h, w = 2, 64, 32
    chans = (64, 128, 256, 512, 512)
    strides = (1, 2, 4, 8, 16)
    kxs = jax.random.split(kx, 5)
    inputs = [jax.random.normal(kxs[i],
                                (n, chans[i], h // strides[i], w // strides[i]),
                                jnp.float32)
              for i in range(5)]

    params = init_params(kp)

    outs = jax.block_until_ready(decode_forward(inputs, params))

    assert len(outs) == 6
    for o in outs:
        assert tuple(o.shape) == (n, 1, h, w), o.shape

    refs = _ref_forward(inputs, params)
    for o, r in zip(outs, refs):
        np.testing.assert_allclose(np.asarray(o), np.asarray(r),
                                   rtol=2e-2, atol=2e-3)

    print("KERNEL_OK")
</pallas_src>

<mosaic_0001>
module attributes {stable_mosaic.version = 11 : i64} {
  func.func @_side_map_kernel(%arg0: i32, %arg1: i32, %arg2: memref<1x128x32x16xf32, #tpu.memory_space<vmem>>, %arg3: memref<128xf32, #tpu.memory_space<smem>>, %arg4: memref<1xf32, #tpu.memory_space<smem>>, %arg5: memref<1x1x32x16xf32, #tpu.memory_space<vmem>>) attributes {dimension_semantics = [#tpu.dimension_semantics<parallel>, #tpu.dimension_semantics<parallel>], iteration_bounds = array<i64: 2, 1>, scalar_prefetch = 0 : i64, scratch_operands = 0 : i64, tpu.core_type = #tpu.core_type<tc>, window_params = [{transform_indices = @transform_0, window_bounds = array<i64: 1, 128, 32, 16>}, {transform_indices = @transform_1, window_bounds = array<i64: 128>}, {transform_indices = @transform_2, window_bounds = array<i64: 1>}, {transform_indices = @transform_3, window_bounds = array<i64: 1, 1, 32, 16>}]} {
    %cst = arith.constant 0.000000e+00 : f32
    %0 = vector.broadcast %cst : f32 to vector<32x16xf32>
    %c0_i32 = arith.constant 0 : i32
    %c128_i32 = arith.constant 128 : i32
    %1 = arith.addi %c0_i32, %c128_i32 : i32
    %c1_i32 = arith.constant 1 : i32
    %2 = scf.for %arg6 = %c0_i32 to %1 step %c1_i32 iter_args(%arg7 = %0) -> (vector<32x16xf32>)  : i32 {
      %9 = arith.index_cast %arg6 : i32 to index
      %10 = memref.load %arg3[%9] : memref<128xf32, #tpu.memory_space<smem>>
      %c0_5 = arith.constant 0 : index
      %11 = arith.index_cast %arg6 : i32 to index
      %c0_6 = arith.constant 0 : index
      %c0_7 = arith.constant 0 : index
      %12 = vector.load %arg2[%c0_5, %11, %c0_6, %c0_7] : memref<1x128x32x16xf32, #tpu.memory_space<vmem>>, vector<1x1x32x16xf32>
      %13 = vector.shape_cast %12 : vector<1x1x32x16xf32> to vector<32x16xf32>
      %14 = vector.broadcast %10 : f32 to vector<32x16xf32>
      %15 = arith.mulf %14, %13 : vector<32x16xf32>
      %16 = arith.addf %arg7, %15 : vector<32x16xf32>
      scf.yield %16 : vector<32x16xf32>
    }
    %c128_i32_0 = arith.constant 128 : i32
    %c0 = arith.constant 0 : index
    %3 = memref.load %arg4[%c0] : memref<1xf32, #tpu.memory_space<smem>>
    %4 = vector.broadcast %3 : f32 to vector<32x16xf32>
    %5 = arith.addf %2, %4 : vector<32x16xf32>
    %c0_1 = arith.constant 0 : index
    %c0_2 = arith.constant 0 : index
    %c0_3 = arith.constant 0 : index
    %c0_4 = arith.constant 0 : index
    %6 = vector.load %arg5[%c0_1, %c0_2, %c0_3, %c0_4] : memref<1x1x32x16xf32, #tpu.memory_space<vmem>>, vector<1x1x32x16xf32>
    %7 = vector.shape_cast %6 : vector<1x1x32x16xf32> to vector<32x16xf32>
    %8 = vector.shape_cast %5 : vector<32x16xf32> to vector<1x1x32x16xf32>
    tpu.vector_store %arg5[%c0_1, %c0_2, %c0_3, %c0_4], %8 {strides = array<i32>} : memref<1x1x32x16xf32, #tpu.memory_space<vmem>>, vector<1x1x32x16xf32>,
    return
  }
  func.func @transform_0(%arg0: i32, %arg1: i32) -> (i32, i32, i32, i32) {
    %c0_i32 = arith.constant 0 : i32
    %c0_i32_0 = arith.constant 0 : i32
    %c0_i32_1 = arith.constant 0 : i32
    return %arg0, %c0_i32, %arg1, %c0_i32_0 : i32, i32, i32, i32
  }
  func.func @transform_1(%arg0: i32, %arg1: i32) -> i32 {
    %c0_i32 = arith.constant 0 : i32
    %c0_i32_0 = arith.constant 0 : i32
    return %c0_i32 : i32
  }
  func.func @transform_2(%arg0: i32, %arg1: i32) -> i32 {
    %c0_i32 = arith.constant 0 : i32
    %c0_i32_0 = arith.constant 0 : i32
    return %c0_i32 : i32
  }
  func.func @transform_3(%arg0: i32, %arg1: i32) -> (i32, i32, i32, i32) {
    %c0_i32 = arith.constant 0 : i32
    %c0_i32_0 = arith.constant 0 : i32
    %c0_i32_1 = arith.constant 0 : i32
    return %arg0, %c0_i32, %arg1, %c0_i32_0 : i32, i32, i32, i32
  }
}

</mosaic_0001>

<bundles_post_ra>
// kernel: tpu_custom_call.1
= control target key start
LH: loop header
LB: loop body
LE: loop exit
PB: predicated region body
PF: predicated region fallthrough
CT: control target
= control target key end

     0   :  { %s651_s0 = inlined_call_operand.vmem [shape: f32[2,128,32,16], index: 0, kind: input, shape index: {}]   ;;  %s652_s1 = inlined_call_operand.vmem [shape: f32[128], index: 1, kind: input, shape index: {}]   ;;  %s653_s2 = inlined_call_operand.<no memory space> [shape: f32[1], index: 2, kind: input, shape index: {}]   ;;  %s654_s3 = inlined_call_operand.vmem [shape: f32[2,1,32,16], index: 3, kind: output, shape index: {}]  }
   0x1   :  { %8 = sst [smem:[#allocation2]] %s653_s2 }
   0x2   :  { %9 = vsyncpa [#allocation4], 0  ;;  %s578_s14 = smov 0   ;;  %s580_s15 = smov 0  }
   0x3   :  { %s582_s16 = smov 0  }
   0x4 LB: > { %s380_s2 = sadd.s32 4294967295, %s532_s16   ;;  %s27_s17 = sadd.s32 1, %s528_s15  ;;  %s532_s16 = sphi %s582_s16, %s15_s16   ;;  %s528_s15 = sphi %s580_s15, %s658_s15   ;;  %s524_s14 = sphi %s578_s14, %s657_s14  }
   0x5   : > { %p29_p0 = scmp.ge.s32.totalorder %s27_s17, 2  ;;  %p382_p1 = scmp.ge.s32.totalorder %s532_s16, 1 }
   0x6   : > { %p130_p2 = scmp.lt.s32.totalorder %s532_s16, 3  ;;  %p603_p4 = scmp.eq.s32.totalorder %s380_s2, 0 }
   0x7   : > { %s660_s17 = smov (%p29_p0, %s27_s17), 0  ;;  %s143_s22 = sshll.u32 %s652_s1, 4  ;;  %s144_s22 = int_to_ptr.vmem [resolvable:$true] %s143_s22 }
   0x8   : > { %p599_p3 = pnand %p382_p1, %p130_p2  ;;  %s471_s23 = scalar_lea.vmem %s144_s22, 16 }
   0x9   : > { %p472_p7 = scmp.ne.s32.totalorder %s144_s22, %s471_s23  ;;  %p479_p11 = scmp.lt.s32.totalorder %s144_s22, %s144_s22 }
   0xa   : > { %p400_p5 = pneg %p599_p3  ;;  %p480_p12 = scmp.lt.s32.totalorder %s471_s23, %s471_s23 }
   0xc   : > { %p401_p6 = pnand %p603_p4, %p400_p5  ;;  %p481_p13 = por %p480_p12, %p479_p11 }
   0xe   : > { %p473_p8 = pneg %p401_p6 }
  0x10   : > { %p474_p9 = pnand %p473_p8, %p472_p7 }
  0x12   : > { %p475_p10 = pneg %p474_p9 }
  0x14   : > { %p482_p0 = pnand %p481_p13, %p475_p10 }
  0x16   : > { %485 = shalt.err (!%p482_p0)
}
  0x17   : > { %s554_s24 = smov [#allocation3]   ;;  %172 = sbr.rel (%p599_p3) target bundleno = 52 (0x34), region = 32 }
  0x18   : > { %403 = dma.vmem_to_smem (!%p401_p6), %s144_s22, 16, %s554_s24, [#allocation4]  }
  0x1c   : > { %519 = dma.done.wait (%p603_p4), [#allocation4], 16  }
  0x1d   : > { %521 = vsyncadd (%p603_p4), [#allocation4], 4294967280 }
  0x1e   : > { %178 = sfence }
  0x1f   : > { %p206_p1 = scmp.lt.s32.totalorder %s524_s14, 1  ;;  %v534_v0 = vmov 0.0   ;;  %v538_v1 = vmov 0.0   ;;  %v542_v2 = vmov 0.0   ;;  %v546_v3 = vmov 0.0   ;;  %s632_s6 = smov 0  }
  0x21   : > { %s662_s14 = smov (!%p206_p1, %s524_s14), 1 }
  0x22   : > { %s394_s25 = sshll.u32 %s662_s14, 12  ;;  %s395_s26 = sshll.u32 %s662_s14, 5 }
  0x23   : > { %s625_s29 = scalar_lea.vmem %s651_s0, %s394_s25  ;;  %s630_s5 = scalar_lea.vmem %s654_s3, %s395_s26 }
  0x24 LB: >> { %s235_s7 = sld [smem:[#allocation3 + %s552_s6]]  ;;  %s391_s8 = sshll.u32 %s552_s6, 5  ;;  %s552_s6 = sphi %s632_s6, %s230_s6   ;;  %v548_v3 = vphi %v546_v3, %v547_v3   ;;  %v544_v2 = vphi %v542_v2, %v543_v2   ;;  %v540_v1 = vphi %v538_v1, %v539_v1   ;;  %v536_v0 = vphi %v534_v0, %v535_v0  }
  0x25   : >> { %s237_s9 = scalar_lea.vmem %s625_s29, %s391_s8  ;;  %s230_s6 = sadd.s32 1, %s552_s6  }
  0x26   : >> { %v238_v4 = vld [vmem:[%s237_s9] sm:$0xff]  ;;  %v239_v5 = vld [vmem:[%s237_s9 + $0x8] sm:$0xff]  ;;  %v240_v6 = vld [vmem:[%s237_s9 + $0x10] sm:$0xff]  ;;  %p227_p2 = scmp.ge.s32.totalorder %s230_s6, 128  }
  0x27   : >> { %v241_v7 = vld [vmem:[%s237_s9 + $0x18] sm:$0xff]  ;;  %s251_s10 = sld [smem:[#allocation2]] (%p227_p2)  ;;  %vm257_vm0 = vcmask (%p227_p2), 130048  }
  0x2a   : >> { %v242_v8 = vstv %s235_s7 }
  0x2b   : >> { %v243_v9 = vmul.f32 %v242_v8, %v238_v4  ;;  %v244_v10 = vmul.f32 %v242_v8, %v239_v5  ;;  %v245_v11 = vmul.f32 %v242_v8, %v240_v6  ;;  %v246_v12 = vmul.f32 %v242_v8, %v241_v7  ;;  %229 = sbr.rel (!%p227_p2) target bundleno = 36 (0x24), region = 75 }
  0x2d   : >> { %v247_v13 = vadd.f32 %v548_v3, %v243_v9   ;;  %v248_v14 = vadd.f32 %v544_v2, %v244_v10   ;;  %v249_v15 = vadd.f32 %v540_v1, %v245_v11   ;;  %v250_v16 = vadd.f32 %v536_v0, %v246_v12  }
  0x2e   : > { %v252_v17 = vstv (%p227_p2), %s251_s10 }
  0x2f   : >> { %v535_v0 = vmov %v250_v16   ;;  %v539_v1 = vmov %v249_v15   ;;  %v543_v2 = vmov %v248_v14   ;;  %v547_v3 = vmov %v247_v13  }
  0x30   : > { %v253_v18 = vadd.f32 %v252_v17, %v247_v13  ;;  %v254_v19 = vadd.f32 %v252_v17, %v248_v14  ;;  %v255_v20 = vadd.f32 %v252_v17, %v249_v15  ;;  %v256_v21 = vadd.f32 %v252_v17, %v250_v16 }
  0x32   : > { %258 = vst.msk [vmem:[%s630_s5] sm:$0xff] %vm257_vm0, %v253_v18  ;;  %259 = vst.msk [vmem:[%s630_s5 + $0x8] sm:$0xff] %vm257_vm0, %v254_v19 }
  0x33   : > { %260 = vst.msk [vmem:[%s630_s5 + $0x10] sm:$0xff] %vm257_vm0, %v255_v20  ;;  %261 = vst.msk [vmem:[%s630_s5 + $0x18] sm:$0xff] %vm257_vm0, %v256_v21 }
  0x34 PF: > { %s15_s16 = sadd.s32 1, %s532_s16   ;;  %s657_s14 = smov %s528_s15 }
  0x35   : > { %p12_p3 = scmp.ge.s32.totalorder %s15_s16, 4   ;;  %s658_s15 = smov %s660_s17 }
  0x37   :  { %14 = sbr.rel (!%p12_p3) target bundleno = 4 (0x4), region = 86 }
  0x3c   :  { %292 = vsyncpa [#allocation4], 1 }
  0x3d   :  { %294 = vsyncpa [#allocation4 + $0x1], 1 }

</bundles_post_ra>
